<compile_context>
chip_gen: v7x
topology: tpu7x:2x2x1
jax: 0.10.0
libtpu: 0.0.40
codegen_flags: <defaults>
</compile_context>

<pallas_src>
import math
import numpy as np
import jax
import jax.numpy as jnp
from jax.experimental import pallas as pl
from jax.experimental.pallas import tpu as pltpu

WINDOW_SIZE = 11
SIGMA = 1.5
C1 = 0.01 ** 2
C2 = 0.03 ** 2


def gaussian_1d(window_size: int, sigma: float) -> np.ndarray:
    g = np.array(
        [math.exp(-((x - window_size // 2) ** 2) / float(2 * sigma ** 2))
         for x in range(window_size)],
        dtype=np.float32,
    )
    return g / g.sum()


def toeplitz_conv_matrix(n: int, g: np.ndarray) -> np.ndarray:
    """M[i, j] = g[j - i + pad] if in range else 0, so (M @ x) is a 1-D 'same'
    cross-correlation with zero padding (matches F.conv2d semantics)."""
    ws = g.shape[0]
    pad = ws // 2
    idx = np.arange(n)
    diff = idx[None, :] - idx[:, None] + pad
    valid = (diff >= 0) & (diff < ws)
    return np.where(valid, g[np.clip(diff, 0, ws - 1)], 0.0).astype(np.float32)


def _ssim_chunk_kernel(a_ref, wcoef_ref, x1_ref, x2_ref, o_ref):
    x1 = x1_ref[0]                    # (H, PW) lane-dense chunk of P planes
    x2 = x2_ref[0]
    H, PW = x1.shape
    FPW = 5 * PW
    f32 = jnp.float32

    # ---- five field slabs, full-width elementwise (no per-plane stores) ----
    fields = jnp.concatenate([x1, x2, x1 * x1, x2 * x2, x1 * x2], axis=1)  # (H, FPW)

    # ---- W-axis conv: 11-tap shift-and-accumulate along the lane axis ------
    # wcoef[t, l] = g[t] if tap t stays inside lane l's plane, else 0
    # (handles the conv zero-padding and stops taps leaking across planes).
    coefs = wcoef_ref[...]                         # (window_size, FPW)
    ws = coefs.shape[0]
    pad = ws // 2
    halo = jnp.zeros((H, pad), dtype=f32)
    fhalo = jnp.concatenate([halo, fields, halo], axis=1)   # (H, FPW + 2*pad)
    conv_w = fhalo[:, 0:FPW] * coefs[0:1, :]
    for t in range(1, ws):
        conv_w = conv_w + fhalo[:, t:t + FPW] * coefs[t:t + 1, :]

    # ---- H-axis conv: single MXU matmul, result stays in vregs -------------
    c = jnp.dot(a_ref[...], conv_w, preferred_element_type=jnp.float32)  # (H, FPW)

    mu1 = c[:, 0 * PW:1 * PW]
    mu2 = c[:, 1 * PW:2 * PW]
    e11 = c[:, 2 * PW:3 * PW]
    e22 = c[:, 3 * PW:4 * PW]
    e12 = c[:, 4 * PW:5 * PW]

    mu1_sq = mu1 * mu1
    mu2_sq = mu2 * mu2
    mu1_mu2 = mu1 * mu2
    sigma1_sq = e11 - mu1_sq
    sigma2_sq = e22 - mu2_sq
    sigma12 = e12 - mu1_mu2
    ssim_map = ((2.0 * mu1_mu2 + C1) * (2.0 * sigma12 + C2)) / (
        (mu1_sq + mu2_sq + C1) * (sigma1_sq + sigma2_sq + C2)
    )

    # ---- lane-dense partial sum: fold sublanes in groups of 8 (pure VPU) ---
    nfull = H // 8
    rem = H - 8 * nfull
    if nfull > 0:
        part = ssim_map[0:8, :]
        for r in range(1, nfull):
            part = part + ssim_map[8 * r:8 * (r + 1), :]
        if rem:
            part = part + jnp.concatenate(
                [ssim_map[8 * nfull:, :], jnp.zeros((8 - rem, PW), f32)], axis=0)
    else:
        part = jnp.concatenate([ssim_map, jnp.zeros((8 - H, PW), f32)], axis=0)
    o_ref[0] = part


def _round_up(x: int, m: int) -> int:
    return -(-x // m) * m


def _vmem_budget_bytes(frac: float = 0.75,
                       fallback_capacity: int = 64 * 1024 * 1024) -> int:
    """~75% of this chip's per-core VMEM (leave headroom for compiler scratch)."""
    try:
        cap = int(pltpu.get_tpu_info().vmem_capacity_bytes)
    except Exception:
        cap = fallback_capacity          # conservative (v7x-sized) fallback
    return max(int(cap * frac), 32 * 1024 * 1024)


def _choose_chunk_planes(n: int, h: int, w: int, budget_bytes: int,
                         min_chunks: int = 2) -> int:
    """Largest divisor P of n whose per-chunk working set (padded shapes,
    double-buffered inputs, constants, live slabs) fits the VMEM budget,
    capped so the grid has >= min_chunks steps (lets the 'parallel' axis shard
    across both v7x TensorCores; costs only ~0.35us extra on v5e/v6e)."""
    h_pad = _round_up(max(h, 1), 8)

    def footprint(p):
        pw_pad = _round_up(p * w, 128)
        fpw_pad = _round_up(5 * p * w, 128)
        img_in = 2 * 2 * h_pad * pw_pad * 4                 # 2 inputs, double-buffered
        out_blk = 2 * 8 * pw_pad * 4
        consts = 2 * (h_pad * h_pad + 16 * fpw_pad) * 4     # A + tap-coeff table
        live = 4 * h_pad * fpw_pad * 4                      # fields/halo/acc/conv slabs
        return img_in + out_blk + consts + live

    max_p = n if n < min_chunks else n // min_chunks
    best = 1
    for d in range(1, n + 1):
        if n % d == 0 and d <= max_p and footprint(d) <= budget_bytes:
            best = d
    return best


def ssim_pallas(img1: jax.Array, img2: jax.Array,
                window_size: int = WINDOW_SIZE, sigma: float = SIGMA) -> jax.Array:
    """Returns scalar SSIM (size_average=True), matching the PyTorch module."""
    B, C, H, W = img1.shape
    N = B * C
    g = gaussian_1d(window_size, sigma)
    pad = window_size // 2

    budget = _vmem_budget_bytes()
    P = _choose_chunk_planes(N, H, W, budget)
    num_chunks = N // P
    PW = P * W
    FPW = 5 * PW

    # H-axis conv operator (dense Toeplitz; see TODO for banded form at large H).
    A = jnp.asarray(toeplitz_conv_matrix(H, g))            # (H, H)

    # Per-tap lane coefficients for the W-axis shift-and-accumulate pass,
    # folded with the per-plane zero-padding mask (pattern repeats every W lanes).
    j = np.arange(W)[None, :]
    t = np.arange(window_size)[:, None]
    src = j + t - pad
    base = np.where((src >= 0) & (src < W), g[:, None], 0.0).astype(np.float32)
    wcoef = jnp.asarray(np.tile(base, (1, 5 * P)))          # (window_size, FPW)

    def relayout(x):
        # (B, C, H, W) -> (num_chunks, H, P*W): planes go onto the lane axis.
        return (x.astype(jnp.float32)
                 .reshape(num_chunks, P, H, W)
                 .transpose(0, 2, 1, 3)
                 .reshape(num_chunks, H, PW))

    x1 = relayout(img1)
    x2 = relayout(img2)

    flops = N * H * W * (3 + 2 * window_size * 5 + 2 * 5 * H + 16)
    bytes_accessed = ((2 * N * H * W + H * H + window_size * FPW) * 4
                      + num_chunks * 8 * PW * 4)

    partial = pl.pallas_call(
        _ssim_chunk_kernel,
        out_shape=jax.ShapeDtypeStruct((num_chunks, 8, PW), jnp.float32),
        grid_spec=pltpu.PrefetchScalarGridSpec(
            num_scalar_prefetch=0,
            grid=(num_chunks,),
            in_specs=[
                pl.BlockSpec((H, H), lambda i: (0, 0)),             # A (fetched once)
                pl.BlockSpec((window_size, FPW), lambda i: (0, 0)),  # tap coeffs
                pl.BlockSpec((1, H, PW), lambda i: (i, 0, 0)),       # img1 chunk
                pl.BlockSpec((1, H, PW), lambda i: (i, 0, 0)),       # img2 chunk
            ],
            out_specs=pl.BlockSpec((1, 8, PW), lambda i: (i, 0, 0)),
        ),
        compiler_params=pltpu.CompilerParams(
            dimension_semantics=("parallel",),
            vmem_limit_bytes=int(budget),
        ),
        cost_estimate=pl.CostEstimate(
            flops=int(flops), transcendentals=0,
            bytes_accessed=int(bytes_accessed)),
    )(A, wcoef, x1, x2)

    return jnp.sum(partial) / jnp.float32(N * H * W)


def ssim_ref(img1, img2, window_size=WINDOW_SIZE, sigma=SIGMA):
    """Pure-JAX reference replicating the PyTorch _ssim (size_average=True)."""
    B, C, H, W = img1.shape
    g = jnp.asarray(gaussian_1d(window_size, sigma))
    w2d = jnp.outer(g, g)
    window = jnp.broadcast_to(w2d, (C, 1, window_size, window_size))
    pad = window_size // 2
    dn = ("NCHW", "OIHW", "NCHW")

    def conv(x):
        return jax.lax.conv_general_dilated(
            x, window, (1, 1), [(pad, pad), (pad, pad)],
            dimension_numbers=dn, feature_group_count=C,
        )

    mu1 = conv(img1)
    mu2 = conv(img2)
    mu1_sq, mu2_sq, mu1_mu2 = mu1 ** 2, mu2 ** 2, mu1 * mu2
    sigma1_sq = conv(img1 * img1) - mu1_sq
    sigma2_sq = conv(img2 * img2) - mu2_sq
    sigma12 = conv(img1 * img2) - mu1_mu2
    ssim_map = ((2 * mu1_mu2 + C1) * (2 * sigma12 + C2)) / (
        (mu1_sq + mu2_sq + C1) * (sigma1_sq + sigma2_sq + C2)
    )
    return jnp.mean(ssim_map)


if __name__ == "__main__":
    key = jax.random.PRNGKey(0)
    k1, k2 = jax.random.split(key)
    B, C, H, W = 2, 4, 16, 16
    img1 = jax.random.uniform(k1, (B, C, H, W), dtype=jnp.float32)
    img2 = jnp.clip(img1 + 0.1 * jax.random.normal(k2, (B, C, H, W)),
                    0.0, 1.0).astype(jnp.float32)

    out = jax.block_until_ready(ssim_pallas(img1, img2))
    ref = jax.block_until_ready(ssim_ref(img1, img2))
    np.testing.assert_allclose(np.asarray(out), np.asarray(ref),
                               rtol=1e-4, atol=1e-5)

    print("KERNEL_OK")
</pallas_src>

<mosaic_0001>
module attributes {stable_mosaic.version = 11 : i64} {
  func.func @_ssim_chunk_kernel(%arg0: i32, %arg1: memref<16x16xf32, #tpu.memory_space<vmem>>, %arg2: memref<11x320xf32, #tpu.memory_space<vmem>>, %arg3: memref<1x16x64xf32, #tpu.memory_space<vmem>>, %arg4: memref<1x16x64xf32, #tpu.memory_space<vmem>>, %arg5: memref<1x8x64xf32, #tpu.memory_space<vmem>>) attributes {dimension_semantics = [#tpu.dimension_semantics<parallel>], iteration_bounds = array<i64: 2>, scalar_prefetch = 0 : i64, scratch_operands = 0 : i64, tpu.core_type = #tpu.core_type<tc>, window_params = [{pipeline_mode = #tpu.pipeline_mode<synchronous>, transform_indices = @transform_0, window_bounds = array<i64: 16, 16>}, {pipeline_mode = #tpu.pipeline_mode<synchronous>, transform_indices = @transform_1, window_bounds = array<i64: 11, 320>}, {transform_indices = @transform_2, window_bounds = array<i64: 1, 16, 64>}, {transform_indices = @transform_3, window_bounds = array<i64: 1, 16, 64>}, {transform_indices = @transform_4, window_bounds = array<i64: 1, 8, 64>}]} {
    %c0 = arith.constant 0 : index
    %c0_0 = arith.constant 0 : index
    %c0_1 = arith.constant 0 : index
    %0 = vector.load %arg3[%c0, %c0_0, %c0_1] : memref<1x16x64xf32, #tpu.memory_space<vmem>>, vector<1x16x64xf32>
    %1 = vector.shape_cast %0 : vector<1x16x64xf32> to vector<16x64xf32>
    %c0_2 = arith.constant 0 : index
    %c0_3 = arith.constant 0 : index
    %c0_4 = arith.constant 0 : index
    %2 = vector.load %arg4[%c0_2, %c0_3, %c0_4] : memref<1x16x64xf32, #tpu.memory_space<vmem>>, vector<1x16x64xf32>
    %3 = vector.shape_cast %2 : vector<1x16x64xf32> to vector<16x64xf32>
    %4 = arith.mulf %1, %1 : vector<16x64xf32>
    %5 = arith.mulf %3, %3 : vector<16x64xf32>
    %6 = arith.mulf %1, %3 : vector<16x64xf32>
    %7 = tpu.concatenate %1, %3, %4, %5, %6 in 1 : vector<16x64xf32>, vector<16x64xf32>, vector<16x64xf32>, vector<16x64xf32>, vector<16x64xf32> -> vector<16x320xf32>
    %c0_5 = arith.constant 0 : index
    %c0_6 = arith.constant 0 : index
    %8 = vector.load %arg2[%c0_5, %c0_6] : memref<11x320xf32, #tpu.memory_space<vmem>>, vector<11x320xf32>
    %cst = arith.constant 0.000000e+00 : f32
    %9 = vector.broadcast %cst : f32 to vector<16x5xf32>
    %10 = tpu.concatenate %9, %7, %9 in 1 : vector<16x5xf32>, vector<16x320xf32>, vector<16x5xf32> -> vector<16x330xf32>
    %11 = vector.extract_strided_slice %10 {offsets = [0, 0], sizes = [16, 320], strides = [1, 1]} : vector<16x330xf32> to vector<16x320xf32>
    %12 = vector.extract_strided_slice %8 {offsets = [0, 0], sizes = [1, 320], strides = [1, 1]} : vector<11x320xf32> to vector<1x320xf32>
    %13 = vector.broadcast %12 : vector<1x320xf32> to vector<16x320xf32>
    %14 = arith.mulf %11, %13 : vector<16x320xf32>
    %15 = vector.extract_strided_slice %10 {offsets = [0, 1], sizes = [16, 320], strides = [1, 1]} : vector<16x330xf32> to vector<16x320xf32>
    %16 = vector.extract_strided_slice %8 {offsets = [1, 0], sizes = [1, 320], strides = [1, 1]} : vector<11x320xf32> to vector<1x320xf32>
    %17 = vector.broadcast %16 : vector<1x320xf32> to vector<16x320xf32>
    %18 = arith.mulf %15, %17 : vector<16x320xf32>
    %19 = arith.addf %14, %18 : vector<16x320xf32>
    %20 = vector.extract_strided_slice %10 {offsets = [0, 2], sizes = [16, 320], strides = [1, 1]} : vector<16x330xf32> to vector<16x320xf32>
    %21 = vector.extract_strided_slice %8 {offsets = [2, 0], sizes = [1, 320], strides = [1, 1]} : vector<11x320xf32> to vector<1x320xf32>
    %22 = vector.broadcast %21 : vector<1x320xf32> to vector<16x320xf32>
    %23 = arith.mulf %20, %22 : vector<16x320xf32>
    %24 = arith.addf %19, %23 : vector<16x320xf32>
    %25 = vector.extract_strided_slice %10 {offsets = [0, 3], sizes = [16, 320], strides = [1, 1]} : vector<16x330xf32> to vector<16x320xf32>
    %26 = vector.extract_strided_slice %8 {offsets = [3, 0], sizes = [1, 320], strides = [1, 1]} : vector<11x320xf32> to vector<1x320xf32>
    %27 = vector.broadcast %26 : vector<1x320xf32> to vector<16x320xf32>
    %28 = arith.mulf %25, %27 : vector<16x320xf32>
    %29 = arith.addf %24, %28 : vector<16x320xf32>
    %30 = vector.extract_strided_slice %10 {offsets = [0, 4], sizes = [16, 320], strides = [1, 1]} : vector<16x330xf32> to vector<16x320xf32>
    %31 = vector.extract_strided_slice %8 {offsets = [4, 0], sizes = [1, 320], strides = [1, 1]} : vector<11x320xf32> to vector<1x320xf32>
    %32 = vector.broadcast %31 : vector<1x320xf32> to vector<16x320xf32>
    %33 = arith.mulf %30, %32 : vector<16x320xf32>
    %34 = arith.addf %29, %33 : vector<16x320xf32>
    %35 = vector.extract_strided_slice %10 {offsets = [0, 5], sizes = [16, 320], strides = [1, 1]} : vector<16x330xf32> to vector<16x320xf32>
    %36 = vector.extract_strided_slice %8 {offsets = [5, 0], sizes = [1, 320], strides = [1, 1]} : vector<11x320xf32> to vector<1x320xf32>
    %37 = vector.broadcast %36 : vector<1x320xf32> to vector<16x320xf32>
    %38 = arith.mulf %35, %37 : vector<16x320xf32>
    %39 = arith.addf %34, %38 : vector<16x320xf32>
    %40 = vector.extract_strided_slice %10 {offsets = [0, 6], sizes = [16, 320], strides = [1, 1]} : vector<16x330xf32> to vector<16x320xf32>
    %41 = vector.extract_strided_slice %8 {offsets = [6, 0], sizes = [1, 320], strides = [1, 1]} : vector<11x320xf32> to vector<1x320xf32>
    %42 = vector.broadcast %41 : vector<1x320xf32> to vector<16x320xf32>
    %43 = arith.mulf %40, %42 : vector<16x320xf32>
    %44 = arith.addf %39, %43 : vector<16x320xf32>
    %45 = vector.extract_strided_slice %10 {offsets = [0, 7], sizes = [16, 320], strides = [1, 1]} : vector<16x330xf32> to vector<16x320xf32>
    %46 = vector.extract_strided_slice %8 {offsets = [7, 0], sizes = [1, 320], strides = [1, 1]} : vector<11x320xf32> to vector<1x320xf32>
    %47 = vector.broadcast %46 : vector<1x320xf32> to vector<16x320xf32>
    %48 = arith.mulf %45, %47 : vector<16x320xf32>
    %49 = arith.addf %44, %48 : vector<16x320xf32>
    %50 = vector.extract_strided_slice %10 {offsets = [0, 8], sizes = [16, 320], strides = [1, 1]} : vector<16x330xf32> to vector<16x320xf32>
    %51 = vector.extract_strided_slice %8 {offsets = [8, 0], sizes = [1, 320], strides = [1, 1]} : vector<11x320xf32> to vector<1x320xf32>
    %52 = vector.broadcast %51 : vector<1x320xf32> to vector<16x320xf32>
    %53 = arith.mulf %50, %52 : vector<16x320xf32>
    %54 = arith.addf %49, %53 : vector<16x320xf32>
    %55 = vector.extract_strided_slice %10 {offsets = [0, 9], sizes = [16, 320], strides = [1, 1]} : vector<16x330xf32> to vector<16x320xf32>
    %56 = vector.extract_strided_slice %8 {offsets = [9, 0], sizes = [1, 320], strides = [1, 1]} : vector<11x320xf32> to vector<1x320xf32>
    %57 = vector.broadcast %56 : vector<1x320xf32> to vector<16x320xf32>
    %58 = arith.mulf %55, %57 : vector<16x320xf32>
    %59 = arith.addf %54, %58 : vector<16x320xf32>
    %60 = vector.extract_strided_slice %10 {offsets = [0, 10], sizes = [16, 320], strides = [1, 1]} : vector<16x330xf32> to vector<16x320xf32>
    %61 = vector.extract_strided_slice %8 {offsets = [10, 0], sizes = [1, 320], strides = [1, 1]} : vector<11x320xf32> to vector<1x320xf32>
    %62 = vector.broadcast %61 : vector<1x320xf32> to vector<16x320xf32>
    %63 = arith.mulf %60, %62 : vector<16x320xf32>
    %64 = arith.addf %59, %63 : vector<16x320xf32>
    %c0_7 = arith.constant 0 : index
    %c0_8 = arith.constant 0 : index
    %65 = vector.load %arg1[%c0_7, %c0_8] : memref<16x16xf32, #tpu.memory_space<vmem>>, vector<16x16xf32>
    %cst_9 = arith.constant dense<0.000000e+00> : vector<16x320xf32>
    %66 = tpu.matmul %65, %64, %cst_9 {dimension_numbers = #tpu.dot_dimension_numbers<[1], [0], [0], [1], [0, 0, 1, 1], [], []>} : vector<16x16xf32>, vector<16x320xf32>, vector<16x320xf32> -> vector<16x320xf32>
    %67 = vector.extract_strided_slice %66 {offsets = [0, 0], sizes = [16, 64], strides = [1, 1]} : vector<16x320xf32> to vector<16x64xf32>
    %68 = vector.extract_strided_slice %66 {offsets = [0, 64], sizes = [16, 64], strides = [1, 1]} : vector<16x320xf32> to vector<16x64xf32>
    %69 = vector.extract_strided_slice %66 {offsets = [0, 128], sizes = [16, 64], strides = [1, 1]} : vector<16x320xf32> to vector<16x64xf32>
    %70 = vector.extract_strided_slice %66 {offsets = [0, 192], sizes = [16, 64], strides = [1, 1]} : vector<16x320xf32> to vector<16x64xf32>
    %71 = vector.extract_strided_slice %66 {offsets = [0, 256], sizes = [16, 64], strides = [1, 1]} : vector<16x320xf32> to vector<16x64xf32>
    %72 = arith.mulf %67, %67 : vector<16x64xf32>
    %73 = arith.mulf %68, %68 : vector<16x64xf32>
    %74 = arith.mulf %67, %68 : vector<16x64xf32>
    %75 = arith.subf %69, %72 : vector<16x64xf32>
    %76 = arith.subf %70, %73 : vector<16x64xf32>
    %77 = arith.subf %71, %74 : vector<16x64xf32>
    %cst_10 = arith.constant 2.000000e+00 : f32
    %78 = vector.broadcast %cst_10 : f32 to vector<16x64xf32>
    %79 = arith.mulf %78, %74 : vector<16x64xf32>
    %cst_11 = arith.constant 9.99999974E-5 : f32
    %80 = vector.broadcast %cst_11 : f32 to vector<16x64xf32>
    %81 = arith.addf %79, %80 : vector<16x64xf32>
    %cst_12 = arith.constant 2.000000e+00 : f32
    %82 = vector.broadcast %cst_12 : f32 to vector<16x64xf32>
    %83 = arith.mulf %82, %77 : vector<16x64xf32>
    %cst_13 = arith.constant 8.99999984E-4 : f32
    %84 = vector.broadcast %cst_13 : f32 to vector<16x64xf32>
    %85 = arith.addf %83, %84 : vector<16x64xf32>
    %86 = arith.mulf %81, %85 : vector<16x64xf32>
    %87 = arith.addf %72, %73 : vector<16x64xf32>
    %cst_14 = arith.constant 9.99999974E-5 : f32
    %88 = vector.broadcast %cst_14 : f32 to vector<16x64xf32>
    %89 = arith.addf %87, %88 : vector<16x64xf32>
    %90 = arith.addf %75, %76 : vector<16x64xf32>
    %cst_15 = arith.constant 8.99999984E-4 : f32
    %91 = vector.broadcast %cst_15 : f32 to vector<16x64xf32>
    %92 = arith.addf %90, %91 : vector<16x64xf32>
    %93 = arith.mulf %89, %92 : vector<16x64xf32>
    %94 = arith.divf %86, %93 : vector<16x64xf32>
    %95 = vector.extract_strided_slice %94 {offsets = [0, 0], sizes = [8, 64], strides = [1, 1]} : vector<16x64xf32> to vector<8x64xf32>
    %96 = vector.extract_strided_slice %94 {offsets = [8, 0], sizes = [8, 64], strides = [1, 1]} : vector<16x64xf32> to vector<8x64xf32>
    %97 = arith.addf %95, %96 : vector<8x64xf32>
    %c0_16 = arith.constant 0 : index
    %c0_17 = arith.constant 0 : index
    %c0_18 = arith.constant 0 : index
    %98 = vector.load %arg5[%c0_16, %c0_17, %c0_18] : memref<1x8x64xf32, #tpu.memory_space<vmem>>, vector<1x8x64xf32>
    %99 = vector.shape_cast %98 : vector<1x8x64xf32> to vector<8x64xf32>
    %100 = vector.shape_cast %97 : vector<8x64xf32> to vector<1x8x64xf32>
    tpu.vector_store %arg5[%c0_16, %c0_17, %c0_18], %100 {strides = array<i32>} : memref<1x8x64xf32, #tpu.memory_space<vmem>>, vector<1x8x64xf32>,
    return
  }
  func.func @transform_0(%arg0: i32) -> (i32, i32) {
    %c0_i32 = arith.constant 0 : i32
    %c0_i32_0 = arith.constant 0 : i32
    %c0_i32_1 = arith.constant 0 : i32
    return %c0_i32, %c0_i32_0 : i32, i32
  }
  func.func @transform_1(%arg0: i32) -> (i32, i32) {
    %c0_i32 = arith.constant 0 : i32
    %c0_i32_0 = arith.constant 0 : i32
    %c0_i32_1 = arith.constant 0 : i32
    return %c0_i32, %c0_i32_0 : i32, i32
  }
  func.func @transform_2(%arg0: i32) -> (i32, i32, i32) {
    %c0_i32 = arith.constant 0 : i32
    %c0_i32_0 = arith.constant 0 : i32
    %c0_i32_1 = arith.constant 0 : i32
    return %arg0, %c0_i32, %c0_i32_0 : i32, i32, i32
  }
  func.func @transform_3(%arg0: i32) -> (i32, i32, i32) {
    %c0_i32 = arith.constant 0 : i32
    %c0_i32_0 = arith.constant 0 : i32
    %c0_i32_1 = arith.constant 0 : i32
    return %arg0, %c0_i32, %c0_i32_0 : i32, i32, i32
  }
  func.func @transform_4(%arg0: i32) -> (i32, i32, i32) {
    %c0_i32 = arith.constant 0 : i32
    %c0_i32_0 = arith.constant 0 : i32
    %c0_i32_1 = arith.constant 0 : i32
    return %arg0, %c0_i32, %c0_i32_0 : i32, i32, i32
  }
}

</mosaic_0001>

<bundles_post_ra>
// kernel: tpu_custom_call.1
= control target key start
LH: loop header
LB: loop body
LE: loop exit
PB: predicated region body
PF: predicated region fallthrough
CT: control target
= control target key end

     0   :  { %s2631_s0 = inlined_call_operand.hbm [shape: f32[16,16], index: 0, kind: input, shape index: {}]   ;;  %s2632_s1 = inlined_call_operand.hbm [shape: f32[11,320], index: 1, kind: input, shape index: {}]   ;;  %s2633_s2 = inlined_call_operand.hbm [shape: f32[2,16,64], index: 2, kind: input, shape index: {}]   ;;  %s2634_s3 = inlined_call_operand.hbm [shape: f32[2,16,64], index: 3, kind: input, shape index: {}]   ;;  %s2635_s4 = inlined_call_operand.hbm [shape: f32[2,8,64], index: 4, kind: output, shape index: {}]  }
   0x1   :  { %2648 = sst [smem:[#allocation14_spill]] %s2631_s0 }
   0x2   :  { %2649 = sst [smem:[#allocation15_spill]] %s2633_s2 }
   0x3   :  { %9 = vsyncpa [#allocation3], 0 }
   0x4   :  { %10 = vsyncpa [#allocation6], 0 }
   0x5   :  { %11 = vsyncpa [#allocation4], 0 }
   0x6   :  { %13 = vsyncpa [#allocation4 + $0x1], 0  ;;  %s1786_s15 = smov 0   ;;  %s1788_s16 = smov 0  }
   0x7   :  { %s1790_s17 = smov 0   ;;  %s1792_s18 = smov 0  }
   0x8 LB: > { %s1807_s19 = sadd.s32 4294967295, %s1728_s18   ;;  %s1390_s20 = sadd.s32 4294967294, %s1728_s18   ;;  %s1728_s18 = sphi %s1792_s18, %s2681_s18   ;;  %s1724_s17 = sphi %s1790_s17, %s2680_s17   ;;  %s1720_s16 = sphi %s1788_s16, %s2679_s16   ;;  %s1716_s15 = sphi %s1786_s15, %s2678_s15  }
   0x9   : > { %s1811_s21 = sadd.s32 1, %s1728_s18   ;;  %s68_s22 = sadd.s32 1, %s1724_s17 }
   0xa   : > { %s65_s23 = ssub.s32 %s1728_s18, %s1811_s21  ;;  %p75_p0 = scmp.ne.s32.totalorder %s1724_s17, %s1720_s16 }
   0xb   : > { %p66_p1 = scmp.eq.s32.totalorder %s65_s23, 0  ;;  %p76_p2 = scmp.eq.s32.totalorder %s1728_s18, 0 }
   0xc   : > { %p81_p3 = scmp.ne.s32.totalorder %s1720_s16, %s1716_s15  ;;  %p2636_p4 = scmp.eq.s32.totalorder %s1807_s19, 0 }
   0xd   : > { %s1823_s24 = scalar_select %p66_p1, %s1724_s17, %s68_s22  }
   0xe   : > { %p1825_p5 = por %p76_p2, %p75_p0  ;;  %p1831_p6 = por %p2636_p4, %p81_p3 }
   0xf   : > { %p131_p7 = scmp.eq.s32.totalorder %s1807_s19, 1  ;;  %p137_p8 = scmp.eq.s32.totalorder %s1390_s20, 1 }
  0x10   : > { %s2650_s25 = scalar_select %p1825_p5, 1, 0 }
  0x11   : > { %s2651_s26 = scalar_select %p1831_p6, 1, 0 }
  0x12   : > { %p1391_p9 = scmp.ge.s32.totalorder %s1728_s18, 1  ;;  %p144_p10 = scmp.lt.s32.totalorder %s1728_s18, 3 }
  0x13   : > { %p1838_p11 = por %p131_p7, %p75_p0  ;;  %p1842_p12 = por %p137_p8, %p81_p3 }
  0x14   : > { %p1846_p13 = pnand %p1391_p9, %p144_p10  ;;  %s1730_s30 = smov [#allocation2]  }
  0x15   : > { %s2652_s27 = scalar_select %p1838_p11, 1, 0 }
  0x16   : > { %s2653_s28 = scalar_select %p1842_p12, 1, 0 }
  0x17   : > { %s2654_s29 = scalar_select %p1846_p13, 1, 0 }
  0x18   : > { %p1450_p1 = pneg %p1846_p13  ;;  %s156_s5 = sshll.u32 %s1730_s30, 4  ;;  %s157_s5 = int_to_ptr.vmem [resolvable:$true] %s156_s5 }
  0x19   : > { %s183_s7 = sand.u32 1, %s1728_s18   ;;  %s2656_s0 = sld [smem:[#allocation14_spill]] }
  0x1a   : > { %p1854_p2 = pnand %p1450_p1, %p2636_p4 }
  0x1c   : > { %p2643_p8 = pneg %p1854_p2 }
  0x1f   : > { %s1538_s10 = scalar_lea.hbm %s2656_s0, 256 }
  0x20   : > { %p1539_p7 = scmp.ne.s32.totalorder %s2656_s0, %s1538_s10  ;;  %p1545_p1 = scmp.lt.u32.totalorder %s1538_s10, %s2656_s0 }
  0x22   : > { %p1541_p9 = pnand %p2643_p8, %p1539_p7 }
  0x24   : > { %p1542_p10 = pneg %p1541_p9 }
  0x26   : > { %p1547_p0 = pnand %p1545_p1, %p1542_p10 }
  0x28   : > { %1550 = shalt.err (!%p1547_p0)
}
  0x29   : > { %s1551_s20 = scalar_lea.vmem %s157_s5, 256  ;;  %p1559_p11 = scmp.lt.s32.totalorder %s157_s5, %s157_s5 }
  0x2a   : > { %p1552_p4 = scmp.ne.s32.totalorder %s157_s5, %s1551_s20  ;;  %p1560_p6 = scmp.lt.s32.totalorder %s1551_s20, %s1551_s20 }
  0x2c   : > { %p1554_p3 = pnand %p1552_p4, %p2643_p8  ;;  %p1561_p13 = por %p1560_p6, %p1559_p11 }
  0x2e   : > { %p1555_p12 = pneg %p1554_p3 }
  0x30   : > { %p1562_p5 = pnand %p1561_p13, %p1555_p12 }
  0x32   : > { %1565 = shalt.err (!%p1562_p5)
}
  0x33   : > { %s2641_s22 = smov 128   ;;  %s2647_s23 = smov 8  }
  0x34   : > { %1453 = dma.hbm_to_vmem [thread:$0]  (!%p1854_p2), %s2656_s0, 256, %s157_s5, [#allocation3], %s2641_s22, %s2641_s22, %s2647_s23  }
  0x35   : > { %p2657_p4 = scmp.ne.s32.totalorder %s2650_s25, 0  ;;  %p2658_p6 = scmp.lt.s32.totalorder %s1728_s18, 2 }
  0x36   : > { %s185_s10 = sand.u32 1, %s1724_s17   ;;  %s2640_s12 = sshll.u32 %s1728_s18, 8 }
  0x37   : > { %p1890_p11 = pnand %p2658_p6, %p2657_p4  ;;  %s1895_s11 = sshll.u32 %s185_s10, 4 }
  0x38   : > { %s2660_s2 = sld [smem:[#allocation15_spill]]  ;;  %s187_s25 = scalar_lea.vmem [#allocation7], %s1895_s11 }
  0x39   : > { %s2659_s9 = scalar_select %p1890_p11, 1, 0 }
  0x3a   : > { %s194_s5 = sshll.u32 %s187_s25, 4  ;;  %s1908_s30 = scalar_lea.sflag [#allocation3], %s183_s7  ;;  %s1906_s5 = int_to_ptr.vmem [resolvable:$true] %s194_s5 }
  0x3b   : > { %p2644_p12 = pneg %p1890_p11 }
  0x3e   : > { %s1903_s20 = scalar_lea.hbm %s2660_s2, %s2640_s12  ;;  %s1571_s14 = scalar_lea.hbm %s2660_s2, 512 }
  0x3f   : > { %s1566_s8 = scalar_lea.hbm %s1903_s20, 256  ;;  %p1572_p3 = scmp.lt.u32.totalorder %s1903_s20, %s2660_s2 }
  0x40   : > { %p1567_p5 = scmp.ne.s32.totalorder %s1903_s20, %s1566_s8  ;;  %p1573_p7 = scmp.lt.u32.totalorder %s1571_s14, %s1566_s8 }
  0x41   : > { %p1575_p10 = scmp.lt.u32.totalorder %s1566_s8, %s1903_s20 }
  0x42   : > { %p1569_p13 = pnand %p2644_p12, %p1567_p5  ;;  %p1574_p9 = por %p1573_p7, %p1572_p3 }
  0x44   : > { %p1570_p0 = pneg %p1569_p13  ;;  %p1576_p1 = por %p1575_p10, %p1574_p9 }
  0x46   : > { %p1577_p4 = pnand %p1576_p1, %p1570_p0 }
  0x48   : > { %1580 = shalt.err (!%p1577_p4)
}
  0x49   : > { %s1581_s7 = scalar_lea.vmem %s1906_s5, 256  ;;  %s1733_s25 = smov [#allocation7]  }
  0x4a   : > { %p1582_p6 = scmp.ne.s32.totalorder %s1906_s5, %s1581_s7  ;;  %s1586_s10 = sshll.u32 %s1733_s25, 4  ;;  %s1587_s10 = int_to_ptr.vmem [resolvable:$false] %s1586_s10 }
  0x4b   : > { %s1588_s22 = scalar_lea.vmem %s1587_s10, 512  ;;  %p1589_p8 = scmp.lt.s32.totalorder %s1906_s5, %s1587_s10 }
  0x4c   : > { %p1584_p5 = pnand %p1582_p6, %p2644_p12  ;;  %p1590_p3 = scmp.lt.s32.totalorder %s1588_s22, %s1581_s7 }
  0x4e   : > { %p1585_p13 = pneg %p1584_p5  ;;  %p1591_p7 = por %p1590_p3, %p1589_p8 }
  0x50   : > { %p1592_p9 = pnand %p1591_p7, %p1585_p13 }
  0x52   : > { %1595 = shalt.err (!%p1592_p9)
}
  0x53   : > { %s2661_s12 = smov 128   ;;  %s1734_s8 = smov [#allocation5]  }
  0x54   : > { %1460 = dma.hbm_to_vmem [thread:$0]  (!%p1890_p11), %s1903_s20, 256, %s1906_s5, %s1908_s30, %s2661_s12, %s2661_s12, %s2647_s23  }
  0x55   : > { %s169_s13 = sshll.u32 %s1734_s8, 4  ;;  %s1596_s7 = scalar_lea.hbm %s2632_s1, 768  ;;  %s170_s13 = int_to_ptr.vmem [resolvable:$true] %s169_s13 }
  0x56   : > { %p1597_p8 = scmp.ne.s32.totalorder %s2632_s1, %s1596_s7  ;;  %p2662_p0 = pneg %p1854_p2 }
  0x57   : > { %p1603_p4 = scmp.lt.u32.totalorder %s1596_s7, %s2632_s1 }
  0x58   : > { %p1599_p10 = pnand %p1597_p8, %p2662_p0 }
  0x5a   : > { %p1600_p1 = pneg %p1599_p10 }
  0x5c   : > { %p1605_p6 = pnand %p1603_p4, %p1600_p1 }
  0x5e   : > { %1608 = shalt.err (!%p1605_p6)
}
  0x5f   : > { %s1609_s20 = scalar_lea.vmem %s170_s13, 768  ;;  %p2663_p13 = pmov %p2662_p0 }
  0x60   : > { %p1610_p5 = scmp.ne.s32.totalorder %s170_s13, %s1609_s20  ;;  %p1617_p9 = scmp.lt.s32.totalorder %s170_s13, %s170_s13 }
  0x61   : > { %p1618_p12 = scmp.lt.s32.totalorder %s1609_s20, %s1609_s20 }
  0x62   : > { %p1612_p3 = pnand %p1610_p5, %p2663_p13 }
  0x63   : > { %p1619_p11 = por %p1618_p12, %p1617_p9 }
  0x64   : > { %p1613_p7 = pneg %p1612_p3 }
  0x66   : > { %p1620_p0 = pnand %p1619_p11, %p1613_p7 }
  0x68   : > { %1623 = shalt.err (!%p1620_p0)
}
  0x69   : > { %s1735_s5 = smov 384   ;;  %s1736_s0 = smov 24  }
  0x6a   : > { %1456 = dma.hbm_to_vmem [thread:$0]  (!%p1854_p2), %s2632_s1, 768, %s170_s13, [#allocation6], %s1735_s5, %s1735_s5, %s1736_s0  }
  0x6b   : > { %s2664_s14 = sshll.u32 %s1728_s18, 8  ;;  %s208_s22 = scalar_lea.vmem [#allocation8], %s1895_s11 }
  0x6c   : > { %s1964_s10 = scalar_lea.hbm %s2634_s3, %s2664_s14  ;;  %s215_s20 = sshll.u32 %s208_s22, 4  ;;  %s1967_s20 = int_to_ptr.vmem [resolvable:$true] %s215_s20 }
  0x6d   : > { %s1624_s23 = scalar_lea.hbm %s1964_s10, 256  ;;  %p2665_p12 = scmp.ne.s32.totalorder %s2659_s9, 0 }
  0x6e   : > { %p1625_p11 = scmp.ne.s32.totalorder %s1964_s10, %s1624_s23  ;;  %s1629_s5 = scalar_lea.hbm %s2634_s3, 512 }
  0x6f   : > { %p2666_p8 = pneg %p2665_p12  ;;  %p1630_p1 = scmp.lt.u32.totalorder %s1964_s10, %s2634_s3 }
  0x70   : > { %p1631_p4 = scmp.lt.u32.totalorder %s1629_s5, %s1624_s23  ;;  %p1633_p5 = scmp.lt.u32.totalorder %s1624_s23, %s1964_s10 }
  0x71   : > { %p1627_p10 = pnand %p1625_p11, %p2666_p8 }
  0x72   : > { %p1632_p6 = por %p1631_p4, %p1630_p1 }
  0x73   : > { %p1628_p2 = pneg %p1627_p10 }
  0x74   : > { %p1634_p13 = por %p1633_p5, %p1632_p6 }
  0x76   : > { %p1635_p3 = pnand %p1634_p13, %p1628_p2 }
  0x78   : > { %1638 = shalt.err (!%p1635_p3)
}
  0x79   : > { %s1639_s11 = scalar_lea.vmem %s1967_s20, 256  ;;  %p2667_p9 = pmov %p2666_p8 }
  0x7a   : > { %p1640_p7 = scmp.ne.s32.totalorder %s1967_s20, %s1639_s11  ;;  %s1737_s8 = smov [#allocation8]  }
  0x7b   : > { %s1644_s14 = sshll.u32 %s1737_s8, 4  ;;  %s1645_s14 = int_to_ptr.vmem [resolvable:$false] %s1644_s14 }
  0x7c   : > { %p1642_p0 = pnand %p1640_p7, %p2667_p9  ;;  %s1646_s25 = scalar_lea.vmem %s1645_s14, 512 }
  0x7d   : > { %p1647_p8 = scmp.lt.s32.totalorder %s1967_s20, %s1645_s14  ;;  %p1648_p10 = scmp.lt.s32.totalorder %s1646_s25, %s1639_s11 }
  0x7e   : > { %p1643_p11 = pneg %p1642_p0 }
  0x7f   : > { %p1649_p1 = por %p1648_p10, %p1647_p8 }
  0x81   : > { %p1650_p4 = pnand %p1649_p1, %p1643_p11 }
  0x83   : > { %1653 = shalt.err (!%p1650_p4)
}
  0x84   : > { %s2668_s23 = smov 8   ;;  %p2669_p2 = scmp.ne.s32.totalorder %s2654_s29, 0 }
  0x85   : > { %1463 = dma.hbm_to_vmem [thread:$0]  (!%p2665_p12), %s1964_s10, 256, %s1967_s20, %s1908_s30, %s2661_s12, %s2661_s12, %s2668_s23  }
  0x86   : > { %227 = sbr.rel (%p2669_p2) target bundleno = 1002 (0x3ea), region = 36  ;;  %p2670_p6 = scmp.eq.s32.totalorder (!%p2669_p2), %s1807_s19, 0 }
  0x8d   : > { %1699 = dma.done.wait (%p2670_p6), [#allocation3], 256   ;;  %p2671_p5 = pmov %p2670_p6 }
  0x8f   : > { %1701 = vsyncadd (%p2671_p5), [#allocation3], 4294967040  ;;  %p2672_p13 = pmov %p2671_p5 }
  0x90   : > { %p2673_p3 = pmov %p2671_p5 }
  0x91   : > { %1703 = dma.done.wait (%p2672_p13), [#allocation6], 768  }
  0x92   : > { %1705 = vsyncadd (%p2673_p3), [#allocation6], 4294966528  ;;  %s237_s9 = sand.u32 1, %s1807_s19   ;;  %s2008_s30 = sand.u32 1, %s1720_s16  }
  0x93   : > { %s1404_s29 = sshll.u32 %s2008_s30, 4  ;;  %s238_s12 = scalar_lea.sflag [#allocation3], %s237_s9 }
  0x94   : > { %s241_s7 = scalar_lea.vmem [#allocation7], %s1404_s29  ;;  %p2674_p12 = scmp.ne.s32.totalorder %s2651_s26, 0 }
  0x96   : > { %1707 = dma.done.wait (%p2674_p12), %s238_s12, 512  }
  0x97   : > { %1709 = vsyncadd (%p2674_p12), %s238_s12, 4294966784  ;;  %v351_v0 = vlaneseq  ;;  %s250_s10 = scalar_lea.vmem [#allocation8], %s1404_s29  ;;  %s1738_s22 = smov 64   ;;  %v2018_v5 = vld [vmem:[%s241_s7] sm:$0xff]  ;;  %v2028_v10 = vld [vmem:[%s241_s7 + $0x8] sm:$0xff]  ;;  %vm306_vm0 = vcmask 523264  }
  0x98   : > { %v282_v2 = vld [vmem:[%s250_s10] sm:$0xff]  ;;  %v283_v4 = vld [vmem:[%s250_s10 + $0x8] sm:$0xff]  ;;  %s1739_s26 = smov 5   ;;  %s1740_s20 = smov 1   ;;  %v284_v54 = vmul.f32 %v2018_v5, %v2018_v5  ;;  %v285_v59 = vmul.f32 %v2028_v10, %v2028_v10  ;;  %vm458_vm1 = vcmask 15360   ;;  %vm526_vm2 = vcmask 23552  }
  0x99   : > { %v2015_v1 = vshrl.u32 %v351_v0, 7  ;;  %292 = vrot.lane.b32.xlu1 %v282_v2, %s1738_s22  ;;  %v286_v3 = vmul.f32 %v282_v2, %v282_v2  ;;  %v287_v6 = vmul.f32 %v283_v4, %v283_v4  ;;  %v2024_v8 = vld [vmem:[#allocation5] sm:$0xff]  ;;  %v288_v9 = vmul.f32 %v282_v2, %v2018_v5  ;;  %v2033_v12 = vld [vmem:[#allocation5 + $0x10] sm:$0xff]  ;;  %v2037_v14 = vld [vmem:[#allocation5 + $0x8] sm:$0xff]  ;;  %s1741_s6 = smov 2   ;;  %s1742_s13 = smov 3  }
  0x9a   : > { %v289_v13 = vmul.f32 %v283_v4, %v2028_v10  ;;  %s1743_s5 = smov 4   ;;  %s1744_s0 = smov 6   ;;  %v315_v41 = vld [vmem:[#allocation5 + $0x20] sm:$0x7]  ;;  %v314_v43 = vld [vmem:[#allocation5 + $0x18] sm:$0x7] }
  0x9b   : > { %300 = vrot.lane.b32.xlu0 %v286_v3, %s1738_s22  ;;  %v2022_v7 = vsub.s32 1, %v2015_v1  ;;  %v2042_v16 = vsub.s32 2, %v2015_v1  ;;  %v507_v19 = vsub.s32 3, %v2015_v1  ;;  %v575_v24 = vsub.s32 4, %v2015_v1  ;;  %s1745_s2 = smov 7   ;;  %s1746_s11 = smov 8  }
  0x9c   : > { %v643_v27 = vsub.s32 5, %v2015_v1  ;;  %v710_v32 = vsub.s32 6, %v2015_v1  ;;  %v778_v35 = vsub.s32 7, %v2015_v1  ;;  %v2076_v40 = vsub.s32 0, %v2015_v1  ;;  %v316_v46 = vld [vmem:[#allocation5 + $0x28] sm:$0x7] }
  0x9d   : > { %294 = vrot.lane.b32.xlu1 %v283_v4, %s1738_s22  ;;  %v372_v11 = vrot.slane %v2024_v8, %v2022_v7  ;;  %v380_v15 = vrot.slane %v2033_v12, %v2022_v7  ;;  %v376_v17 = vrot.slane %v2037_v14, %v2022_v7  ;;  %v444_v18 = vrot.slane %v2037_v14, %v2042_v16  ;;  %s1747_s8 = smov 9   ;;  %s1748_s14 = smov 10  }
  0x9e   : > { %v440_v20 = vrot.slane %v2024_v8, %v2042_v16  ;;  %v508_v21 = vrot.slane %v2024_v8, %v507_v19  ;;  %v448_v22 = vrot.slane %v2033_v12, %v2042_v16  ;;  %v516_v23 = vrot.slane %v2033_v12, %v507_v19  ;;  %s1749_s25 = smov 127   ;;  %s1750_s23 = smov 126  }
  0x9f   : > { %302 = vrot.lane.b32.xlu0 %v287_v6, %s1738_s22  ;;  %v512_v25 = vrot.slane %v2037_v14, %v507_v19  ;;  %v580_v26 = vrot.slane %v2037_v14, %v575_v24  ;;  %v576_v28 = vrot.slane %v2024_v8, %v575_v24  ;;  %v644_v29 = vrot.slane %v2024_v8, %v643_v27  ;;  %s1751_s9 = smov 125   ;;  %s1752_s29 = smov 124  }
  0xa0   : > { %v584_v30 = vrot.slane %v2033_v12, %v575_v24  ;;  %v652_v31 = vrot.slane %v2033_v12, %v643_v27  ;;  %v648_v33 = vrot.slane %v2037_v14, %v643_v27  ;;  %v715_v34 = vrot.slane %v2037_v14, %v710_v32  ;;  %s1753_s12 = smov 123   ;;  %s1754_s7 = smov 122  }
  0xa1   : > { %327 = vrot.lane.b32.xlu1 %v288_v9, %s1739_s26  ;;  %v711_v36 = vrot.slane %v2024_v8, %v710_v32  ;;  %v779_v37 = vrot.slane %v2024_v8, %v778_v35  ;;  %v719_v38 = vrot.slane %v2033_v12, %v710_v32  ;;  %v787_v39 = vrot.slane %v2033_v12, %v778_v35  ;;  %s1755_s10 = smov 121   ;;  %p2675_p9 = scmp.ne.s32.totalorder %s2652_s27, 0 }
  0xa2   : > { %v783_v42 = vrot.slane %v2037_v14, %v778_v35  ;;  %v851_v44 = vrot.slane %v315_v41, %v2076_v40  ;;  %v847_v45 = vrot.slane %v314_v43, %v2076_v40  ;;  %v915_v47 = vrot.slane %v314_v43, %v2022_v7 }
  0xa3   : > { %384 = vrot.lane.b32.xlu0 %v372_v11, %s1740_s20  ;;  %v855_v48 = vrot.slane %v316_v46, %v2076_v40  ;;  %v923_v49 = vrot.slane %v316_v46, %v2022_v7  ;;  %v919_v50 = vrot.slane %v315_v41, %v2022_v7  ;;  %v987_v51 = vrot.slane %v315_v41, %v2042_v16 }
  0xa4   : > { %v983_v52 = vrot.slane %v314_v43, %v2042_v16  ;;  %v991_v53 = vrot.slane %v316_v46, %v2042_v16  ;;  %vm594_vm3 = vcmask 31744   ;;  %vm335_vm4 = vcmask 39936  }
  0xa5   : > { %333 = vrot.lane.b32.xlu1 %v289_v13, %s1739_s26  ;;  %vm729_vm5 = vcmask 48128   ;;  %vm797_vm6 = vcmask 56320   ;;  %vm865_vm7 = vcmask 64512   ;;  %vm933_vm8 = vcmask 72704  }
  0xa6   : > { %vm1001_vm9 = vcmask 80896   ;;  %vm348_vm10 = vcmask 564224   ;;  %vm390_vm11 = vcmask 7168   ;;  %vm1050_vm12 = vcmask 130048  }
  0xa7   : > { %388 = vrot.lane.b32.xlu0 %v380_v15, %s1740_s20  ;;  %vm420_vm13 = vcmask 1039360   ;;  %vm488_vm14 = vcmask 1031168   ;;  %vm556_vm15 = vcmask 1022976  }
  0xa9   : > { %386 = vrot.lane.b32.xlu1 %v376_v17, %s1740_s20  ;;  %s1757_s20 = smov 119  }
  0xab   : > { %454 = vrot.lane.b32.xlu0 %v444_v18, %s1741_s6 }
  0xad   : > { %452 = vrot.lane.b32.xlu1 %v440_v20, %s1741_s6 }
  0xaf   : > { %520 = vrot.lane.b32.xlu0 %v508_v21, %s1742_s13 }
  0xb1   : > { %456 = vrot.lane.b32.xlu1 %v448_v22, %s1741_s6  ;;  %s1758_s6 = smov 118  }
  0xb3   : > { %524 = vrot.lane.b32.xlu0 %v516_v23, %s1742_s13 }
  0xb5   : > { %522 = vrot.lane.b32.xlu1 %v512_v25, %s1742_s13  ;;  %s1412_s13 = sshll.u32 %s1807_s19, 7  ;;  %s1760_s19 = smov [#allocation9]  }
  0xb7   : > { %590 = vrot.lane.b32.xlu0 %v580_v26, %s1743_s5 }
  0xb9   : > { %588 = vrot.lane.b32.xlu1 %v576_v28, %s1743_s5 }
  0xbb   : > { %656 = vrot.lane.b32.xlu0 %v644_v29, %s1739_s26 }
  0xbd   : > { %592 = vrot.lane.b32.xlu1 %v584_v30, %s1743_s5 }
  0xbf   : > { %660 = vrot.lane.b32.xlu0 %v652_v31, %s1739_s26 }
  0xc1   : > { %658 = vrot.lane.b32.xlu1 %v648_v33, %s1739_s26 }
  0xc3   : > { %725 = vrot.lane.b32.xlu0 %v715_v34, %s1744_s0 }
  0xc5   : > { %723 = vrot.lane.b32.xlu1 %v711_v36, %s1744_s0 }
  0xc7   : > { %791 = vrot.lane.b32.xlu0 %v779_v37, %s1745_s2 }
  0xc9   : > { %727 = vrot.lane.b32.xlu1 %v719_v38, %s1744_s0 }
  0xcb   : > { %795 = vrot.lane.b32.xlu0 %v787_v39, %s1745_s2 }
  0xcd   : > { %793 = vrot.lane.b32.xlu1 %v783_v42, %s1745_s2 }
  0xcf   : > { %861 = vrot.lane.b32.xlu0 %v851_v44, %s1746_s11 }
  0xd1   : > { %859 = vrot.lane.b32.xlu1 %v847_v45, %s1746_s11 }
  0xd3   : > { %927 = vrot.lane.b32.xlu0 %v915_v47, %s1747_s8 }
  0xd5   : > { %863 = vrot.lane.b32.xlu1 %v855_v48, %s1746_s11 }
  0xd7   : > { %931 = vrot.lane.b32.xlu0 %v923_v49, %s1747_s8 }
  0xd9   : > { %929 = vrot.lane.b32.xlu1 %v919_v50, %s1747_s8  ;;  %s2586_s8 = scalar_lea.hbm %s2635_s4, %s1412_s13 }
  0xdb   : > { %997 = vrot.lane.b32.xlu0 %v987_v51, %s1748_s14 }
  0xdd   : > { %995 = vrot.lane.b32.xlu1 %v983_v52, %s1748_s14 }
  0xe1   : > { %999 = vrot.lane.b32.xlu1 %v991_v53, %s1748_s14  ;;  %s1268_s14 = scalar_lea.sflag [#allocation4], %s2008_s30 }
 0x10b   : > { %v293_v55 = vpop.permute.xlu1 %292 }
 0x10c   : > { %v307_v56 = vsel %vm306_vm0, %v2018_v5, %v293_v55 }
 0x10d   : > { %323 = vrot.lane.b32.xlu0 %v307_v56, %s1739_s26  ;;  %v301_v57 = vpop.permute.xlu0 %300 }
 0x10e   : > { %v309_v58 = vsel %vm306_vm0, %v284_v54, %v301_v57 }
 0x10f   : > { %v295_v60 = vpop.permute.xlu1 %294 }
 0x110   : > { %v308_v61 = vsel %vm306_vm0, %v2028_v10, %v295_v60 }
 0x111   : > { %329 = vrot.lane.b32.xlu1 %v308_v61, %s1739_s26  ;;  %325 = vrot.lane.b32.xlu0 %v309_v58, %s1739_s26  ;;  %v303_v62 = vpop.permute.xlu0 %302 }
 0x112   : > { %v310_v63 = vsel %vm306_vm0, %v285_v59, %v303_v62 }
 0x113   : > { %v2101_v0 = vpop.permute.xlu1 %327 }
 0x115   : > { %331 = vrot.lane.b32.xlu0 %v310_v63, %s1739_s26  ;;  %v2104_v1 = vpop.permute.xlu0 %384  ;;  %s1756_s26 = smov 120  }
 0x117   : > { %v2106_v2 = vpop.permute.xlu1 %333 }
 0x119   : > { %v2108_v3 = vpop.permute.xlu0 %388 }
 0x11b   : > { %v2110_v4 = vpop.permute.xlu1 %386 }
 0x11d   : > { %v2112_v5 = vpop.permute.xlu0 %454 }
 0x11f   : > { %v2114_v6 = vpop.permute.xlu1 %452 }
 0x121   : > { %v2116_v7 = vpop.permute.xlu0 %520 }
 0x123   : > { %v457_v9 = vpop.permute.xlu1 %456 }
 0x124   : > { %v2120_v10 = vsel %vm458_vm1, %v2112_v5, %v457_v9 }
 0x125   : > { %v525_v11 = vpop.permute.xlu0 %524 }
 0x127   : > { %v2122_v13 = vpop.permute.xlu1 %522 }
 0x128   : > { %v2126_v15 = vsel %vm526_vm2, %v2122_v13, %v525_v11 }
 0x129   : > { %v2128_v16 = vpop.permute.xlu0 %590 }
 0x12b   : > { %v2130_v17 = vpop.permute.xlu1 %588 }
 0x12d   : > { %v2132_v18 = vpop.permute.xlu0 %656 }
 0x12f   : > { %v593_v19 = vpop.permute.xlu1 %592 }
 0x130   : > { %v2136_v20 = vsel %vm594_vm3, %v2128_v16, %v593_v19 }
 0x131   : > { %v661_v21 = vpop.permute.xlu0 %660 }
 0x133   : > { %v2138_v22 = vpop.permute.xlu1 %658 }
 0x134   : > { %v2142_v23 = vsel %vm335_vm4, %v2138_v22, %v661_v21 }
 0x135   : > { %v2144_v24 = vpop.permute.xlu0 %725 }
 0x137   : > { %v2146_v25 = vpop.permute.xlu1 %723 }
 0x139   : > { %v2148_v26 = vpop.permute.xlu0 %791 }
 0x13b   : > { %v728_v27 = vpop.permute.xlu1 %727 }
 0x13c   : > { %v2152_v28 = vsel %vm729_vm5, %v2144_v24, %v728_v27 }
 0x13d   : > { %v796_v29 = vpop.permute.xlu0 %795 }
 0x13f   : > { %v2154_v30 = vpop.permute.xlu1 %793 }
 0x140   : > { %v2158_v31 = vsel %vm797_vm6, %v2154_v30, %v796_v29 }
 0x141   : > { %v2160_v32 = vpop.permute.xlu0 %861 }
 0x143   : > { %v2162_v33 = vpop.permute.xlu1 %859 }
 0x145   : > { %v2164_v34 = vpop.permute.xlu0 %927 }
 0x147   : > { %v864_v35 = vpop.permute.xlu1 %863 }
 0x148   : > { %v2168_v36 = vsel %vm865_vm7, %v2160_v32, %v864_v35 }
 0x149   : > { %v932_v37 = vpop.permute.xlu0 %931 }
 0x14b   : > { %v930_v38 = vpop.permute.xlu1 %929 }
 0x14c   : > { %v934_v39 = vsel %vm933_vm8, %v2164_v34, %v930_v38  ;;  %v935_v41 = vsel %vm933_vm8, %v930_v38, %v932_v37 }
 0x14d   : > { %v998_v43 = vpop.permute.xlu0 %997 }
 0x14f   : > { %v2171_v42 = vpop.permute.xlu1 %995 }
 0x153   : > { %v1000_v44 = vpop.permute.xlu1 %999 }
 0x154   : > { %v1003_v45 = vsel %vm1001_vm9, %v998_v43, %v1000_v44 }
 0x17f   : > { %v324_v46 = vpop.permute.xlu0 %323 }
 0x180   : > { %v2175_v47 = vsel %vm335_vm4, 0.0, %v324_v46 }
 0x181   : > { %v396_v48 = vmul.f32 %v2104_v1, %v2175_v47  ;;  %v464_v53 = vmul.f32 %v2114_v6, %v2175_v47  ;;  %v532_v56 = vmul.f32 %v2116_v7, %v2175_v47  ;;  %v600_v60 = vmul.f32 %v2130_v17, %v2175_v47 }
 0x182   : > { %v667_v11 = vmul.f32 %v2132_v18, %v2175_v47 }
 0x183   : > { %v330_v49 = vpop.permute.xlu1 %329  ;;  %408 = vrot.lane.b32.xlu0 %v396_v48, %s1749_s25  ;;  %v326_v50 = vpop.permute.xlu0 %325  ;;  %v871_v48 = vmul.f32 %v2162_v33, %v2175_v47 }
 0x184   : > { %v2181_v51 = vsel %vm335_vm4, 0.0, %v330_v49  ;;  %v337_v57 = vsel %vm335_vm4, %v326_v50, %v2101_v0  ;;  %v2204_v61 = vsel %vm335_vm4, %v324_v46, %v326_v50  ;;  %v939_v50 = vmul.f32 %v2164_v34, %v2175_v47 }
 0x185   : > { %v399_v52 = vmul.f32 %v2104_v1, %v2181_v51  ;;  %v467_v55 = vmul.f32 %v2114_v6, %v2181_v51  ;;  %v535_v59 = vmul.f32 %v2116_v7, %v2181_v51  ;;  %v2206_v62 = vsel %vm348_vm10, %v337_v57, 0.0 }
 0x186   : > { %v603_v9 = vmul.f32 %v2130_v17, %v2181_v51  ;;  %v2222_v19 = vmul.f32 %v934_v39, %v2204_v61  ;;  %v2225_v21 = vmul.f32 %v935_v41, %v2206_v62  ;;  %v2237_v37 = vmul.f32 %v1003_v45, %v2206_v62 }
 0x187   : > { %414 = vrot.lane.b32.xlu1 %v399_v52, %s1749_s25  ;;  %476 = vrot.lane.b32.xlu0 %v464_v53, %s1750_s23  ;;  %v332_v54 = vpop.permute.xlu0 %331  ;;  %v738_v44 = vmul.f32 %v2146_v25, %v2181_v51  ;;  %v806_v46 = vmul.f32 %v2148_v26, %v2181_v51  ;;  %v391_v52 = vsel %vm390_vm11, %v2104_v1, %v2110_v4 }
 0x188   : > { %v339_v58 = vsel %vm335_vm4, %v332_v54, %v2106_v2  ;;  %v2209_v63 = vsel %vm335_vm4, %v330_v49, %v332_v54  ;;  %v1002_v2 = vsel %vm1001_vm9, %v2171_v42, %v998_v43  ;;  %v874_v49 = vmul.f32 %v2162_v33, %v2181_v51 }
 0x189   : > { %v2211_v0 = vsel %vm348_vm10, %v339_v58, 0.0  ;;  %v2228_v27 = vmul.f32 %v934_v39, %v2209_v63  ;;  %v2234_v35 = vmul.f32 %v1002_v2, %v2204_v61  ;;  %v2240_v38 = vmul.f32 %v1002_v2, %v2209_v63 }
 0x18a   : > { %v2231_v29 = vmul.f32 %v935_v41, %v2211_v0  ;;  %v2243_v43 = vmul.f32 %v1003_v45, %v2211_v0  ;;  %v670_v39 = vmul.f32 %v2132_v18, %v2181_v51  ;;  %v735_v41 = vmul.f32 %v2146_v25, %v2175_v47 }
 0x18b   : > { %482 = vrot.lane.b32.xlu1 %v467_v55, %s1750_s23  ;;  %544 = vrot.lane.b32.xlu0 %v532_v56, %s1751_s9  ;;  %v803_v45 = vmul.f32 %v2148_v26, %v2175_v47  ;;  %v942_v53 = vmul.f32 %v2164_v34, %v2181_v51  ;;  %v397_v54 = vmul.f32 %v391_v52, %v2204_v61 }
 0x18c   : > { %v392_v55 = vsel %vm390_vm11, %v2110_v4, %v2108_v3  ;;  %v400_v57 = vmul.f32 %v391_v52, %v2209_v63  ;;  %v459_v1 = vsel %vm458_vm1, %v2114_v6, %v2112_v5  ;;  %v466_v3 = vmul.f32 %v2120_v10, %v2206_v62 }
 0x18d   : > { %v398_v56 = vmul.f32 %v392_v55, %v2206_v62  ;;  %v401_v34 = vmul.f32 %v392_v55, %v2211_v0  ;;  %v465_v58 = vmul.f32 %v459_v1, %v2204_v61  ;;  %v468_v4 = vmul.f32 %v459_v1, %v2209_v63 }
 0x18e   : > { %v527_v5 = vsel %vm526_vm2, %v2116_v7, %v2122_v13  ;;  %v469_v6 = vmul.f32 %v2120_v10, %v2211_v0  ;;  %v595_v7 = vsel %vm594_vm3, %v2130_v17, %v2128_v16  ;;  %v537_v10 = vmul.f32 %v2126_v15, %v2211_v0 }
 0x18f   : > { %550 = vrot.lane.b32.xlu1 %v535_v59, %s1751_s9  ;;  %612 = vrot.lane.b32.xlu0 %v600_v60, %s1752_s29  ;;  %v533_v59 = vmul.f32 %v527_v5, %v2204_v61  ;;  %v534_v60 = vmul.f32 %v2126_v15, %v2206_v62  ;;  %v536_v2 = vmul.f32 %v527_v5, %v2209_v63  ;;  %vm624_vm1 = vcmask 1014784  }
 0x190   : > { %v601_v13 = vmul.f32 %v595_v7, %v2204_v61  ;;  %v662_v16 = vsel %vm335_vm4, %v2132_v18, %v2138_v22  ;;  %v605_v15 = vmul.f32 %v2136_v20, %v2211_v0  ;;  %v730_v18 = vsel %vm729_vm5, %v2146_v25, %v2144_v24 }
 0x191   : > { %v668_v17 = vmul.f32 %v662_v16, %v2204_v61  ;;  %v736_v22 = vmul.f32 %v730_v18, %v2204_v61  ;;  %v798_v24 = vsel %vm797_vm6, %v2148_v26, %v2154_v30  ;;  %v866_v26 = vsel %vm865_vm7, %v2162_v33, %v2160_v32 }
 0x192   : > { %v804_v25 = vmul.f32 %v798_v24, %v2204_v61  ;;  %v872_v30 = vmul.f32 %v866_v26, %v2204_v61  ;;  %v876_v32 = vmul.f32 %v2168_v36, %v2211_v0  ;;  %v1759_v33 = vmov 0.0  }
 0x193   : > { %618 = vrot.lane.b32.xlu1 %v603_v9, %s1752_s29  ;;  %679 = vrot.lane.b32.xlu0 %v667_v11, %s1753_s12  ;;  %v602_v9 = vmul.f32 %v2136_v20, %v2206_v62  ;;  %v604_v11 = vmul.f32 %v595_v7, %v2209_v63  ;;  %v672_v20 = vmul.f32 %v2142_v23, %v2211_v0  ;;  %vm691_vm2 = vcmask 1006592  }
 0x194   : > { %1121 = vmatprep.mubr.f32.mxu0 %v1759_v33  ;;  %vm759_vm3 = vcmask 998400   ;;  %vm827_vm4 = vcmask 990208   ;;  %vm895_vm5 = vcmask 982016   ;;  %vm963_vm6 = vcmask 973824  }
 0x195   : > { %vm1031_vm7 = vcmask 965632  }
 0x197   : > { %685 = vrot.lane.b32.xlu1 %v670_v39, %s1753_s12  ;;  %747 = vrot.lane.b32.xlu0 %v735_v41, %s1754_s7  ;;  %v669_v39 = vmul.f32 %v2142_v23, %v2206_v62  ;;  %v671_v41 = vmul.f32 %v662_v16, %v2209_v63  ;;  %v740_v23 = vmul.f32 %v2152_v28, %v2211_v0 }
 0x19b   : > { %753 = vrot.lane.b32.xlu1 %v738_v44, %s1754_s7  ;;  %815 = vrot.lane.b32.xlu0 %v803_v45, %s1755_s10  ;;  %v737_v44 = vmul.f32 %v2152_v28, %v2206_v62  ;;  %v739_v45 = vmul.f32 %v730_v18, %v2209_v63  ;;  %v808_v28 = vmul.f32 %v2158_v31, %v2211_v0 }
 0x19f   : > { %821 = vrot.lane.b32.xlu1 %v806_v46, %s1755_s10  ;;  %883 = vrot.lane.b32.xlu0 %v871_v48, %s1756_s26  ;;  %v805_v46 = vmul.f32 %v2158_v31, %v2206_v62  ;;  %v807_v48 = vmul.f32 %v798_v24, %v2209_v63  ;;  %v2388_v31 = vld [vmem:[#allocation2] sm:$0xff] }
 0x1a0   : > { %1425 = vmatprep.mubr.msk.f32.mxu1 %vm1050_vm12, %v2388_v31 }
 0x1a3   : > { %889 = vrot.lane.b32.xlu1 %v874_v49, %s1756_s26  ;;  %951 = vrot.lane.b32.xlu0 %v939_v50, %s1757_s20  ;;  %v873_v49 = vmul.f32 %v2168_v36, %v2206_v62  ;;  %v875_v50 = vmul.f32 %v866_v26, %v2209_v63 }
 0x1a7   : > { %957 = vrot.lane.b32.xlu1 %v942_v53, %s1757_s20  ;;  %410 = vrot.lane.b32.xlu0 %v397_v54, %s1749_s25 }
 0x1ab   : > { %412 = vrot.lane.b32.xlu1 %v398_v56, %s1749_s25  ;;  %416 = vrot.lane.b32.xlu0 %v400_v57, %s1749_s25 }
 0x1af   : > { %418 = vrot.lane.b32.xlu1 %v401_v34, %s1749_s25  ;;  %478 = vrot.lane.b32.xlu0 %v465_v58, %s1750_s23 }
 0x1b3   : > { %480 = vrot.lane.b32.xlu1 %v466_v3, %s1750_s23  ;;  %484 = vrot.lane.b32.xlu0 %v468_v4, %s1750_s23 }
 0x1b7   : > { %486 = vrot.lane.b32.xlu1 %v469_v6, %s1750_s23  ;;  %546 = vrot.lane.b32.xlu0 %v533_v59, %s1751_s9  ;;  %s1658_s23 = sshll.u32 %s1760_s19, 4  ;;  %s1659_s23 = int_to_ptr.vmem [resolvable:$false] %s1658_s23 }
 0x1bb   : > { %548 = vrot.lane.b32.xlu1 %v534_v60, %s1751_s9  ;;  %552 = vrot.lane.b32.xlu0 %v536_v2, %s1751_s9 }
 0x1bf   : > { %554 = vrot.lane.b32.xlu1 %v537_v10, %s1751_s9  ;;  %614 = vrot.lane.b32.xlu0 %v601_v13, %s1752_s29  ;;  %s1660_s9 = scalar_lea.vmem %s1659_s23, 256 }
 0x1c3   : > { %616 = vrot.lane.b32.xlu1 %v602_v9, %s1752_s29  ;;  %620 = vrot.lane.b32.xlu0 %v604_v11, %s1752_s29 }
 0x1c7   : > { %622 = vrot.lane.b32.xlu1 %v605_v15, %s1752_s29  ;;  %681 = vrot.lane.b32.xlu0 %v668_v17, %s1753_s12 }
 0x1cb   : > { %683 = vrot.lane.b32.xlu1 %v669_v39, %s1753_s12  ;;  %687 = vrot.lane.b32.xlu0 %v671_v41, %s1753_s12 }
 0x1cf   : > { %689 = vrot.lane.b32.xlu1 %v672_v20, %s1753_s12  ;;  %749 = vrot.lane.b32.xlu0 %v736_v22, %s1754_s7 }
 0x1d3   : > { %751 = vrot.lane.b32.xlu1 %v737_v44, %s1754_s7  ;;  %755 = vrot.lane.b32.xlu0 %v739_v45, %s1754_s7 }
 0x1d7   : > { %757 = vrot.lane.b32.xlu1 %v740_v23, %s1754_s7  ;;  %817 = vrot.lane.b32.xlu0 %v804_v25, %s1755_s10 }
 0x1db   : > { %819 = vrot.lane.b32.xlu1 %v805_v46, %s1755_s10  ;;  %823 = vrot.lane.b32.xlu0 %v807_v48, %s1755_s10 }
 0x1df   : > { %825 = vrot.lane.b32.xlu1 %v808_v28, %s1755_s10  ;;  %885 = vrot.lane.b32.xlu0 %v872_v30, %s1756_s26 }
 0x1e3   : > { %887 = vrot.lane.b32.xlu1 %v873_v49, %s1756_s26  ;;  %891 = vrot.lane.b32.xlu0 %v875_v50, %s1756_s26 }
 0x1e7   : > { %893 = vrot.lane.b32.xlu1 %v876_v32, %s1756_s26  ;;  %953 = vrot.lane.b32.xlu0 %v2222_v19, %s1757_s20  ;;  %v1007_v19 = vmul.f32 %v2171_v42, %v2175_v47 }
 0x1eb   : > { %955 = vrot.lane.b32.xlu1 %v2225_v21, %s1757_s20  ;;  %959 = vrot.lane.b32.xlu0 %v2228_v27, %s1757_s20 }
 0x1ef   : > { %961 = vrot.lane.b32.xlu1 %v2231_v29, %s1757_s20  ;;  %1021 = vrot.lane.b32.xlu0 %v2234_v35, %s1758_s6  ;;  %v1010_v29 = vmul.f32 %v2171_v42, %v2181_v51  ;;  %v354_v42 = vrot.slane %v2024_v8, %v2076_v40 }
 0x1f1   : > { %v363_v5 = vmul.f32 %v354_v42, %v2175_v47  ;;  %v366_v7 = vmul.f32 %v354_v42, %v2181_v51 }
 0x1f3   : > { %1023 = vrot.lane.b32.xlu1 %v2237_v37, %s1758_s6  ;;  %1027 = vrot.lane.b32.xlu0 %v2240_v38, %s1758_s6 }
 0x1f5   : > { %v409_v36 = vpop.permute.xlu0 %408 }
 0x1f7   : > { %1029 = vrot.lane.b32.xlu1 %v2243_v43, %s1758_s6  ;;  %1019 = vrot.lane.b32.xlu0 %v1007_v19, %s1758_s6 }
 0x1f9   : > { %v415_v21 = vpop.permute.xlu1 %414  ;;  %v477_v27 = vpop.permute.xlu0 %476 }
 0x1fb   : > { %1025 = vrot.lane.b32.xlu1 %v1010_v29, %s1758_s6 }
 0x1fd   : > { %v483_v35 = vpop.permute.xlu1 %482  ;;  %v545_v37 = vpop.permute.xlu0 %544 }
 0x201   : > { %v551_v38 = vpop.permute.xlu1 %550  ;;  %v613_v52 = vpop.permute.xlu0 %612 }
 0x205   : > { %v619_v53 = vpop.permute.xlu1 %618  ;;  %v680_v54 = vpop.permute.xlu0 %679 }
 0x209   : > { %v686_v55 = vpop.permute.xlu1 %685  ;;  %v748_v56 = vpop.permute.xlu0 %747 }
 0x20d   : > { %v754_v57 = vpop.permute.xlu1 %753  ;;  %v2398_v1 = vpop.permute.xlu0 %815 }
 0x211   : > { %v2400_v34 = vpop.permute.xlu1 %821  ;;  %v2402_v43 = vpop.permute.xlu0 %883 }
 0x215   : > { %v2404_v58 = vpop.permute.xlu1 %889  ;;  %v2406_v3 = vpop.permute.xlu0 %951 }
 0x219   : > { %v2410_v4 = vpop.permute.xlu1 %957  ;;  %v2413_v6 = vpop.permute.xlu0 %410 }
 0x21a   : > { %v421_v59 = vsel %vm420_vm13, %v409_v36, %v2413_v6 }
 0x21b   : > { %v431_v60 = vadd.f32 %v421_v59, %v363_v5 }
 0x21d   : > { %v2417_v2 = vpop.permute.xlu1 %412  ;;  %v2420_v10 = vpop.permute.xlu0 %416 }
 0x21e   : > { %v423_v8 = vsel %vm420_vm13, %v415_v21, %v2420_v10 }
 0x21f   : > { %v434_v13 = vadd.f32 %v423_v8, %v366_v7 }
 0x221   : > { %v2424_v9 = vpop.permute.xlu1 %418  ;;  %v2426_v47 = vpop.permute.xlu0 %478 }
 0x222   : > { %v489_v11 = vsel %vm488_vm14, %v477_v27, %v2426_v47 }
 0x223   : > { %v499_v16 = vadd.f32 %v489_v11, %v431_v60 }
 0x225   : > { %v2430_v15 = vpop.permute.xlu1 %480  ;;  %v2432_v17 = vpop.permute.xlu0 %484 }
 0x226   : > { %v491_v51 = vsel %vm488_vm14, %v483_v35, %v2432_v17 }
 0x227   : > { %v502_v39 = vadd.f32 %v491_v51, %v434_v13 }
 0x229   : > { %v2436_v41 = vpop.permute.xlu1 %486  ;;  %v2438_v18 = vpop.permute.xlu0 %546 }
 0x22a   : > { %v557_v20 = vsel %vm556_vm15, %v545_v37, %v2438_v18 }
 0x22b   : > { %v567_v22 = vadd.f32 %v557_v20, %v499_v16 }
 0x22d   : > { %v2442_v44 = vpop.permute.xlu1 %548  ;;  %v2444_v45 = vpop.permute.xlu0 %552 }
 0x22e   : > { %v559_v24 = vsel %vm556_vm15, %v551_v38, %v2444_v45 }
 0x22f   : > { %v570_v23 = vadd.f32 %v559_v24, %v502_v39 }
 0x231   : > { %v2448_v25 = vpop.permute.xlu1 %554  ;;  %v2450_v46 = vpop.permute.xlu0 %614 }
 0x232   : > { %v625_v48 = vsel %vm624_vm1, %v613_v52, %v2450_v46 }
 0x233   : > { %v635_v26 = vadd.f32 %v625_v48, %v567_v22 }
 0x235   : > { %v2454_v28 = vpop.permute.xlu1 %616  ;;  %v2456_v30 = vpop.permute.xlu0 %620 }
 0x236   : > { %v627_v49 = vsel %vm624_vm1, %v619_v53, %v2456_v30 }
 0x237   : > { %v638_v50 = vadd.f32 %v627_v49, %v570_v23  ;;  %v424_v49 = vsel %vm420_vm13, %v2420_v10, %v2424_v9 }
 0x239   : > { %v2460_v32 = vpop.permute.xlu1 %622  ;;  %v2462_v36 = vpop.permute.xlu0 %681 }
 0x23a   : > { %v692_v19 = vsel %vm691_vm2, %v680_v54, %v2462_v36 }
 0x23b   : > { %v702_v21 = vadd.f32 %v692_v19, %v635_v26 }
 0x23d   : > { %v2466_v27 = vpop.permute.xlu1 %683  ;;  %v2468_v29 = vpop.permute.xlu0 %687 }
 0x23e   : > { %v694_v35 = vsel %vm691_vm2, %v686_v55, %v2468_v29 }
 0x23f   : > { %v705_v37 = vadd.f32 %v694_v35, %v638_v50 }
 0x241   : > { %v2472_v38 = vpop.permute.xlu1 %689  ;;  %v2474_v52 = vpop.permute.xlu0 %749 }
 0x242   : > { %v760_v53 = vsel %vm759_vm3, %v748_v56, %v2474_v52 }
 0x243   : > { %v770_v42 = vadd.f32 %v760_v53, %v702_v21 }
 0x245   : > { %v2478_v5 = vpop.permute.xlu1 %751  ;;  %v756_v54 = vpop.permute.xlu0 %755 }
 0x246   : > { %v762_v59 = vsel %vm759_vm3, %v754_v57, %v756_v54  ;;  %v362_v57 = vrot.slane %v2033_v12, %v2076_v40 }
 0x247   : > { %v773_v60 = vadd.f32 %v762_v59, %v705_v37 }
 0x248   : > { %v365_v23 = vmul.f32 %v362_v57, %v2206_v62  ;;  %v368_v12 = vmul.f32 %v362_v57, %v2211_v0  ;;  %v490_v0 = vsel %vm488_vm14, %v2426_v47, %v2430_v15 }
 0x249   : > { %v758_v7 = vpop.permute.xlu1 %757  ;;  %v2481_v8 = vpop.permute.xlu0 %817 }
 0x24a   : > { %v828_v55 = vsel %vm827_vm4, %v2398_v1, %v2481_v8  ;;  %v358_v1 = vrot.slane %v2037_v14, %v2076_v40  ;;  %v433_v50 = vadd.f32 %v2417_v2, %v365_v23  ;;  %v436_v19 = vadd.f32 %v2424_v9, %v368_v12 }
 0x24b   : > { %v838_v13 = vadd.f32 %v828_v55, %v770_v42  ;;  %v560_v9 = vsel %vm556_vm15, %v2444_v45, %v2448_v25 }
 0x24c   : > { %v364_v14 = vmul.f32 %v358_v1, %v2204_v61  ;;  %v367_v40 = vmul.f32 %v358_v1, %v2209_v63  ;;  %v501_v63 = vadd.f32 %v2430_v15, %v433_v50  ;;  %v504_v35 = vadd.f32 %v2436_v41, %v436_v19 }
 0x24d   : > { %v2486_v11 = vpop.permute.xlu1 %819  ;;  %v824_v16 = vpop.permute.xlu0 %823  ;;  %v626_v15 = vsel %vm624_vm1, %v2450_v46, %v2454_v28 }
 0x24e   : > { %v830_v56 = vsel %vm827_vm4, %v2400_v34, %v824_v16  ;;  %v422_v34 = vsel %vm420_vm13, %v2413_v6, %v2417_v2  ;;  %v492_v6 = vsel %vm488_vm14, %v2432_v17, %v2436_v41  ;;  %v558_v2 = vsel %vm556_vm15, %v2438_v18, %v2442_v44 }
 0x24f   : > { %v841_v51 = vadd.f32 %v830_v56, %v773_v60  ;;  %v432_v10 = vadd.f32 %v422_v34, %v364_v14  ;;  %v569_v17 = vadd.f32 %v2442_v44, %v501_v63  ;;  %v572_v53 = vadd.f32 %v2448_v25, %v504_v35 }
 0x250   : > { %v628_v41 = vsel %vm624_vm1, %v2456_v30, %v2460_v32  ;;  %v693_v44 = vsel %vm691_vm2, %v2462_v36, %v2466_v27  ;;  %v695_v25 = vsel %vm691_vm2, %v2468_v29, %v2472_v38  ;;  %v829_v29 = vsel %vm827_vm4, %v2481_v8, %v2486_v11 }
 0x251   : > { %v826_v39 = vpop.permute.xlu1 %825  ;;  %v886_v20 = vpop.permute.xlu0 %885  ;;  %v500_v47 = vadd.f32 %v490_v0, %v432_v10  ;;  %v637_v45 = vadd.f32 %v2454_v28, %v569_v17  ;;  %v640_v55 = vadd.f32 %v2460_v32, %v572_v53  ;;  %v761_v28 = vsel %vm759_vm3, %v2474_v52, %v2478_v5 }
 0x252   : > { %v896_v22 = vsel %vm895_vm5, %v2402_v43, %v886_v20  ;;  %v763_v32 = vsel %vm759_vm3, %v756_v54, %v758_v7 }
 0x253   : > { %v2496_v24 = vadd.f32 %v896_v22, %v838_v13  ;;  %v568_v42 = vadd.f32 %v558_v2, %v500_v47  ;;  %v704_v30 = vadd.f32 %v2466_v27, %v637_v45  ;;  %v707_v56 = vadd.f32 %v2472_v38, %v640_v55 }
 0x254   : > { %v831_v27 = vsel %vm827_vm4, %v824_v16, %v826_v39 }
 0x255   : > { %v888_v48 = vpop.permute.xlu1 %887  ;;  %v892_v26 = vpop.permute.xlu0 %891  ;;  %v636_v46 = vadd.f32 %v626_v15, %v568_v42  ;;  %v772_v1 = vadd.f32 %v2478_v5, %v704_v30  ;;  %v775_v23 = vadd.f32 %v758_v7, %v707_v56 }
 0x256   : > { %v898_v43 = vsel %vm895_vm5, %v2404_v58, %v892_v26  ;;  %v435_v58 = vadd.f32 %v424_v49, %v367_v40  ;;  %v897_v54 = vsel %vm895_vm5, %v886_v20, %v888_v48 }
 0x257   : > { %v2510_v62 = vadd.f32 %v898_v43, %v841_v51  ;;  %v703_v51 = vadd.f32 %v693_v44, %v636_v46  ;;  %v840_v12 = vadd.f32 %v2486_v11, %v772_v1  ;;  %v843_v52 = vadd.f32 %v826_v39, %v775_v23 }
 0x258   : > { %v503_v37 = vadd.f32 %v492_v6, %v435_v58 }
 0x259   : > { %v894_v21 = vpop.permute.xlu1 %893  ;;  %v954_v61 = vpop.permute.xlu0 %953  ;;  %v771_v38 = vadd.f32 %v761_v28, %v703_v51  ;;  %v908_v40 = vadd.f32 %v888_v48, %v840_v12 }
 0x25a   : > { %v571_v18 = vadd.f32 %v560_v9, %v503_v37  ;;  %v899_v49 = vsel %vm895_vm5, %v892_v26, %v894_v21  ;;  %v911_v50 = vadd.f32 %v894_v21, %v843_v52  ;;  %v964_v26 = vsel %vm963_vm6, %v2406_v3, %v954_v61 }
 0x25b   : > { %v839_v43 = vadd.f32 %v829_v29, %v771_v38  ;;  %v974_v53 = vadd.f32 %v964_v26, %v2496_v24 }
 0x25c   : > { %v639_v13 = vadd.f32 %v628_v41, %v571_v18 }
 0x25d   : > { %v956_v59 = vpop.permute.xlu1 %955  ;;  %v960_v60 = vpop.permute.xlu0 %959  ;;  %v907_v19 = vadd.f32 %v897_v54, %v839_v43 }
 0x25e   : > { %v706_v57 = vadd.f32 %v695_v25, %v639_v13  ;;  %v965_v8 = vsel %vm963_vm6, %v954_v61, %v956_v59  ;;  %v976_v11 = vadd.f32 %v956_v59, %v908_v40  ;;  %v966_v48 = vsel %vm963_vm6, %v2410_v4, %v960_v60  ;;  %v1049_v59 = vld [vmem:[#allocation2 + $0x8] sm:$0xff] }
 0x25f   : > { %v975_v6 = vadd.f32 %v965_v8, %v907_v19  ;;  %v977_v3 = vadd.f32 %v966_v48, %v2510_v62 }
 0x260   : > { %v774_v34 = vadd.f32 %v763_v32, %v706_v57 }
 0x261   : > { %v962_v22 = vpop.permute.xlu1 %961  ;;  %v1022_v36 = vpop.permute.xlu0 %1021 }
 0x262   : > { %v842_v14 = vadd.f32 %v831_v27, %v774_v34  ;;  %v967_v16 = vsel %vm963_vm6, %v960_v60, %v962_v22  ;;  %v979_v39 = vadd.f32 %v962_v22, %v911_v50 }
 0x264   : > { %v910_v0 = vadd.f32 %v899_v49, %v842_v14 }
 0x265   : > { %v1024_v5 = vpop.permute.xlu1 %1023  ;;  %v1028_v7 = vpop.permute.xlu0 %1027 }
 0x266   : > { %v1033_v20 = vsel %vm1031_vm7, %v1022_v36, %v1024_v5  ;;  %v978_v10 = vadd.f32 %v967_v16, %v910_v0  ;;  %v1044_v21 = vadd.f32 %v1024_v5, %v976_v11 }
 0x267   : > { %v1043_v9 = vadd.f32 %v1033_v20, %v975_v6 }
 0x269   : > { %v1030_v58 = vpop.permute.xlu1 %1029  ;;  %v1020_v63 = vpop.permute.xlu0 %1019 }
 0x26a   : > { %v1035_v35 = vsel %vm1031_vm7, %v1028_v7, %v1030_v58  ;;  %v1047_v2 = vadd.f32 %v1030_v58, %v979_v39  ;;  %v1032_v37 = vsel %vm1031_vm7, %v1020_v63, %v1022_v36 }
 0x26b   : > { %v1046_v47 = vadd.f32 %v1035_v35, %v978_v10  ;;  %v1042_v42 = vadd.f32 %v1032_v37, %v974_v53 }
 0x26c   : > { %v1432_v17 = vpack.c.bf16 %v1047_v2, %v1044_v21 }
 0x26d   : > { %v1026_v61 = vpop.permute.xlu1 %1025  ;;  %v1428_v15 = vpack.c.bf16 %v1046_v47, %v1043_v9 }
 0x26e   : > { %v1034_v41 = vsel %vm1031_vm7, %v1026_v61, %v1028_v7  ;;  %1433 = vmatprep.subr.bf16.mxu1 %v1432_v17 }
 0x26f   : > { %v1045_v4 = vadd.f32 %v1034_v41, %v977_v3  ;;  %1429 = vmatprep.subr.bf16.mxu0 %v1428_v15  ;;  %1435 = vmatpush3.bf16.msra.mxu1 %v1432_v17 }
 0x271   : > { %v1430_v18 = vpack.c.bf16 %v1045_v4, %v1042_v42 }
 0x272   : > { %1426 = vmatmul.mubr.msk.f32.vlgmr.msra.gmra.mrb[0].mxu1 %vm1050_vm12, %v1049_v59 }
 0x273   : > { %1431 = vmatpush1.bf16.msra.mxu0 %v1430_v18 }
 0x276   : > { %1407 = vmatmul.mubr.msk.f32.vlgmr.msra.gmra.mrb[0].mxu0 %vm1050_vm12, %v2388_v31 }
 0x277   : > { %1127 = vmatprep.mubr.f32.mxu0 %v1759_v33 }
 0x27a   : > { %1408 = vmatmul.mubr.msk.f32.gmra.mrb[2].mxu0 %vm1050_vm12, %v1049_v59 }
 0x345   : > { %v1427_v55 = vpop.f32.mrb[0].mxu1 }
 0x346   : > { %v1200_v13 = vpop.f32.mrb[1].mxu1 }
 0x349   : > { %v1123_v24 = vpop.f32.mrb[0].mxu0 }
 0x34a   : > { %v1209_v62 = vmul.f32 %v1123_v24, %v1123_v24  ;;  %v1125_v60 = vpop.f32.mrb[1].mxu0 }
 0x34c   : > { %1237 = vrot.lane.b32.xlu0 %v1209_v62, %s1738_s22  ;;  %v1221_v44 = vsub.f32 %v1125_v60, %v1209_v62 }
 0x34d   : > { %v1129_v45 = vpop.f32.mrb[2].mxu0 }
 0x34e   : > { %v1210_v25 = vmul.f32 %v1129_v45, %v1129_v45  ;;  %v1131_v46 = vpop.f32.mrb[3].mxu0 }
 0x350   : > { %1249 = vrot.lane.b32.xlu0 %v1221_v44, %s1738_s22  ;;  %1239 = vrot.lane.b32.xlu1 %v1210_v25, %s1738_s22  ;;  %v1222_v31 = vsub.f32 %v1131_v46, %v1210_v25 }
 0x354   : > { %1213 = vrot.lane.b32.xlu0 %v1123_v24, %s1738_s22  ;;  %1251 = vrot.lane.b32.xlu1 %v1222_v31, %s1738_s22 }
 0x358   : > { %1215 = vrot.lane.b32.xlu1 %v1129_v45, %s1738_s22  ;;  %s1406_s22 = sshll.u32 %s2008_s30, 3 }
 0x359   : > { %s279_s5 = scalar_lea.vmem [#allocation9], %s1406_s22 }
 0x35a   : > { %s1281_s0 = sshll.u32 %s279_s5, 4  ;;  %s2588_s0 = int_to_ptr.vmem [resolvable:$true] %s1281_s0 }
 0x35b   : > { %s1654_s25 = scalar_lea.vmem %s2588_s0, 128  ;;  %p1661_p8 = scmp.lt.s32.totalorder %s2588_s0, %s1659_s23 }
 0x35c   : > { %p1655_p7 = scmp.ne.s32.totalorder %s2588_s0, %s1654_s25  ;;  %p1662_p10 = scmp.lt.s32.totalorder %s1660_s9, %s1654_s25 }
 0x35e   : > { %p1656_p0 = pnand %p1655_p7, %p2675_p9  ;;  %p1663_p1 = por %p1662_p10, %p1661_p8 }
 0x360   : > { %p1657_p11 = pneg %p1656_p0 }
 0x362   : > { %p1664_p4 = pnand %p1663_p1, %p1657_p11 }
 0x3be   : > { %v1238_v33 = vpop.permute.xlu0 %1237 }
 0x3bf   : > { %v1243_v30 = vadd.f32 %v1238_v33, %v1209_v62 }
 0x3c1   : > { %v1245_v51 = vadd.f32 0.0001, %v1243_v30 }
 0x3c2   : > { %v1250_v56 = vpop.permute.xlu0 %1249  ;;  %v1240_v28 = vpop.permute.xlu1 %1239 }
 0x3c3   : > { %v1255_v32 = vadd.f32 %v1250_v56, %v1221_v44  ;;  %v1244_v22 = vadd.f32 %v1240_v28, %v1210_v25 }
 0x3c5   : > { %v1257_v57 = vadd.f32 0.0009, %v1255_v32  ;;  %v1246_v38 = vadd.f32 0.0001, %v1244_v22 }
 0x3c6   : > { %v1214_v36 = vpop.permute.xlu0 %1213  ;;  %v1252_v1 = vpop.permute.xlu1 %1251 }
 0x3c7   : > { %v1259_v23 = vmul.f32 %v1257_v57, %v1245_v51  ;;  %v1219_v29 = vmul.f32 %v1214_v36, %v1123_v24  ;;  %v1256_v27 = vadd.f32 %v1252_v1, %v1222_v31 }
 0x3c9   : > { %v1225_v34 = vmul.f32 2.0, %v1219_v29  ;;  %v1258_v12 = vadd.f32 0.0009, %v1256_v27  ;;  %v1223_v52 = vsub.f32 %v1200_v13, %v1219_v29  ;;  %1534 = vrcp.f32 %v1259_v23 }
 0x3ca   : > { %v1216_v54 = vpop.permute.xlu1 %1215 }
 0x3cb   : > { %v1260_v49 = vmul.f32 %v1258_v12, %v1246_v38  ;;  %v1229_v43 = vmul.f32 2.0, %v1223_v52  ;;  %v1220_v14 = vmul.f32 %v1216_v54, %v1129_v45  ;;  %v1227_v5 = vadd.f32 0.0001, %v1225_v34 }
 0x3cd   : > { %1536 = vrcp.f32 %v1260_v49  ;;  %v1231_v7 = vadd.f32 0.0009, %v1229_v43  ;;  %v1224_v40 = vsub.f32 %v1427_v55, %v1220_v14  ;;  %v1226_v50 = vmul.f32 2.0, %v1220_v14 }
 0x3cf   : > { %v1233_v8 = vmul.f32 %v1231_v7, %v1227_v5  ;;  %v1230_v16 = vmul.f32 2.0, %v1224_v40  ;;  %v1228_v19 = vadd.f32 0.0001, %v1226_v50 }
 0x3d1   : > { %v1232_v0 = vadd.f32 0.0009, %v1230_v16 }
 0x3d3   : > { %v1234_v11 = vmul.f32 %v1232_v0, %v1228_v19  ;;  %v1535_v39 = vpop.eup %1534 }
 0x3d4   : > { %v1262_v26 = vmul.f32 %v1535_v39, %v1233_v8 }
 0x3d7   : > { %v1537_v20 = vpop.eup %1536 }
 0x3d8   : > { %v1264_v6 = vmul.f32 %v1537_v20, %v1234_v11 }
 0x3da   : > { %v1265_v10 = vadd.f32 %v1264_v6, %v1262_v26 }
 0x3dc   : > { %1266 = vst.msk [vmem:[%s279_s5] sm:$0xff] %vm306_vm0, %v1265_v10 }
 0x3dd   : > { %1667 = shalt.err (!%p1664_p4)
}
 0x3de   : > { %s1668_s30 = scalar_lea.hbm %s2586_s8, 128  ;;  %s1672_s7 = scalar_lea.hbm %s2635_s4, 256 }
 0x3df   : > { %p1669_p2 = scmp.ne.s32.totalorder %s2586_s8, %s1668_s30  ;;  %p1673_p13 = scmp.lt.u32.totalorder %s2586_s8, %s2635_s4 }
 0x3e0   : > { %p1674_p3 = scmp.lt.u32.totalorder %s1672_s7, %s1668_s30  ;;  %p1676_p7 = scmp.lt.u32.totalorder %s1668_s30, %s2586_s8 }
 0x3e1   : > { %p1670_p6 = pnand %p1669_p2, %p2675_p9 }
 0x3e2   : > { %p1675_p12 = por %p1674_p3, %p1673_p13 }
 0x3e3   : > { %p1671_p5 = pneg %p1670_p6 }
 0x3e4   : > { %p1677_p0 = por %p1676_p7, %p1675_p12 }
 0x3e6   : > { %p1678_p11 = pnand %p1677_p0, %p1671_p5 }
 0x3e8   : > { %1681 = shalt.err (!%p1678_p11)
}
 0x3e9   : > { %1448 = dma.vmem_to_hbm [thread:$0]  (%p2675_p9), %s2588_s0, 128, %s2586_s8, %s1268_s14  }
 0x3ea PF: > { %s1293_s20 = sand.u32 1, %s1716_s15   ;;  %p2676_p8 = scmp.ne.s32.totalorder %s2653_s28, 0 }
 0x3eb   : > { %p2677_p10 = scmp.ge.s32.totalorder %s1728_s18, 2  ;;  %s1294_s6 = scalar_lea.sflag [#allocation4], %s1293_s20 }
 0x3ed   : > { %p1465_p1 = pnand %p2677_p10, %p2676_p8 }
 0x3ef   : > { %1711 = dma.done.wait (!%p1465_p1), %s1294_s6, 128  }
 0x3f0   : > { %1713 = vsyncadd (!%p1465_p1), %s1294_s6, 4294967168  ;;  %p16_p4 = scmp.ge.s32.totalorder %s1811_s21, 4   ;;  %s2678_s15 = smov %s1720_s16 }
 0x3f1   : > { %s2679_s16 = smov %s1724_s17  ;;  %s2680_s17 = smov %s1823_s24 }
 0x3f2   : > { %s2681_s18 = smov %s1811_s21  ;;  %18 = sbr.rel (!%p16_p4) target bundleno = 8 (0x8), region = 99 }
 0x3f9   :  { %1299 = vsyncpa [#allocation3], 1 }
 0x3fa   :  { %1301 = vsyncpa [#allocation3 + $0x1], 1 }
 0x3fb   :  { %1302 = vsyncpa [#allocation6], 1 }
 0x3fc   :  { %1303 = vsyncpa [#allocation4], 1 }
 0x3fd   :  { %1305 = vsyncpa [#allocation4 + $0x1], 1 }

</bundles_post_ra>
